<compile_context>
chip_gen: v6e
topology: v6e:2x2x1
jax: 0.10.0
libtpu: 0.0.40
codegen_flags: <defaults>
</compile_context>

<pallas_src>
import functools

import jax
import jax.numpy as jnp
from jax import lax
from jax.experimental import pallas as pl
from jax.experimental.pallas import tpu as pltpu


def _tpu_vmem_bytes():
    try:
        return int(pltpu.get_tpu_info().vmem_capacity_bytes)
    except Exception:  # mock / older runtime: assume 128 MiB parts
        return 128 * 1024 * 1024


_VMEM_PHYS = _tpu_vmem_bytes()
# linear / FFN / LN kernels: v5e/v6e -> 64 MiB, v7x (64 MiB physical) -> 32 MiB
_VMEM_LINEAR = int(min(64 * 1024 * 1024, _VMEM_PHYS * 0.5))
# attention kernel: v6e -> ~76 MiB, v5e -> ~76 MiB, v7x -> ~38 MiB (<= 48 MiB guidance)
_VMEM_ATTN = int(min(96 * 1024 * 1024, _VMEM_PHYS * 0.6))

_HW_STRIP = 2048      # lane strip for the one-hot sampling matrix
_TQ_MAX = 128         # query-tile rows for the attention core


def _row_tile(m, target=1024):
    """Row-tile size: full array when small, otherwise a streaming tile."""
    return m if m <= target else target


# ----------------------------------------------------------------------------
# generic linear:  out = x @ W + b      (x f32/bf16, W bf16, b f32)
# ----------------------------------------------------------------------------
def _linear_kernel(x_ref, w_ref, b_ref, o_ref):
    x = x_ref[...]
    if x.dtype != jnp.bfloat16:
        x = x.astype(jnp.bfloat16)
    y = jnp.dot(x, w_ref[...], preferred_element_type=jnp.float32) + b_ref[...]
    o_ref[...] = y.astype(o_ref.dtype)


def linear(x, w, b, out_dtype=jnp.float32):
    M, K = x.shape
    N = w.shape[1]
    TM = _row_tile(M)
    cost = pl.CostEstimate(
        flops=int(2 * M * K * N),
        transcendentals=0,
        bytes_accessed=int(x.size * x.dtype.itemsize + w.size * 2
                           + M * N * jnp.dtype(out_dtype).itemsize),
    )
    return pl.pallas_call(
        _linear_kernel,
        out_shape=jax.ShapeDtypeStruct((M, N), out_dtype),
        grid=(pl.cdiv(M, TM),),
        in_specs=[
            pl.BlockSpec((TM, K), lambda i: (i, 0)),   # x streams
            pl.BlockSpec((K, N), lambda i: (0, 0)),    # weights stay VMEM-resident
            pl.BlockSpec((1, N), lambda i: (0, 0)),
        ],
        out_specs=pl.BlockSpec((TM, N), lambda i: (i, 0)),
        compiler_params=pltpu.CompilerParams(
            dimension_semantics=("parallel",),
            vmem_limit_bytes=_VMEM_LINEAR,
        ),
        cost_estimate=cost,
    )(x, w, b.reshape(1, N))


# ----------------------------------------------------------------------------
# fused output_proj + residual + LayerNorm:  out = LN(src + attn @ Wo + bo)
#   attn arrives in bf16 (already MXU-ready); residual / LN math stays f32.
# ----------------------------------------------------------------------------
def _proj_add_ln_kernel(a_ref, x_ref, w_ref, b_ref, g_ref, be_ref, o_ref):
    y = (
        jnp.dot(a_ref[...], w_ref[...], preferred_element_type=jnp.float32)
        + b_ref[...]
    )
    s = x_ref[...] + y
    mu = jnp.mean(s, axis=-1, keepdims=True)
    var = jnp.mean((s - mu) ** 2, axis=-1, keepdims=True)
    o_ref[...] = (s - mu) * lax.rsqrt(var + 1e-5) * g_ref[...] + be_ref[...]


def proj_add_layernorm(attn, src, w, b, gamma, beta):
    M, D = src.shape
    TM = _row_tile(M)
    cost = pl.CostEstimate(
        flops=int(2 * M * D * D + 8 * M * D),
        transcendentals=int(M),
        bytes_accessed=int(M * D * 2 + M * D * 4 + D * D * 2 + M * D * 4),
    )
    return pl.pallas_call(
        _proj_add_ln_kernel,
        out_shape=jax.ShapeDtypeStruct((M, D), jnp.float32),
        grid=(pl.cdiv(M, TM),),
        in_specs=[
            pl.BlockSpec((TM, D), lambda i: (i, 0)),   # attn (bf16)
            pl.BlockSpec((TM, D), lambda i: (i, 0)),   # residual (f32)
            pl.BlockSpec((D, D), lambda i: (0, 0)),
            pl.BlockSpec((1, D), lambda i: (0, 0)),
            pl.BlockSpec((1, D), lambda i: (0, 0)),
            pl.BlockSpec((1, D), lambda i: (0, 0)),
        ],
        out_specs=pl.BlockSpec((TM, D), lambda i: (i, 0)),
        compiler_params=pltpu.CompilerParams(
            dimension_semantics=("parallel",),
            vmem_limit_bytes=_VMEM_LINEAR,
        ),
        cost_estimate=cost,
    )(attn, src, w, b.reshape(1, D), gamma.reshape(1, D), beta.reshape(1, D))


# ----------------------------------------------------------------------------
# fused FFN:  out = LN(x + linear2(relu(linear1(x))))
#   (LN / residual math kept f32 on the VPU -- bf16 only on MXU operands.)
# ----------------------------------------------------------------------------
def _ffn_kernel(x_ref, w1_ref, b1_ref, w2_ref, b2_ref, g_ref, be_ref, o_ref):
    x = x_ref[...]
    h = (
        jnp.dot(x.astype(jnp.bfloat16), w1_ref[...],
                preferred_element_type=jnp.float32)
        + b1_ref[...]
    )
    h = jnp.maximum(h, 0.0)  # relu
    y = (
        jnp.dot(h.astype(jnp.bfloat16), w2_ref[...],
                preferred_element_type=jnp.float32)
        + b2_ref[...]
    )
    s = x + y
    mu = jnp.mean(s, axis=-1, keepdims=True)
    var = jnp.mean((s - mu) ** 2, axis=-1, keepdims=True)
    o_ref[...] = (s - mu) * lax.rsqrt(var + 1e-5) * g_ref[...] + be_ref[...]


def ffn_forward(x, w1, b1, w2, b2, gamma, beta):
    M, D = x.shape
    Dff = w1.shape[1]
    TM = _row_tile(M)
    cost = pl.CostEstimate(
        flops=int(4 * M * D * Dff + 10 * M * D),
        transcendentals=int(M),
        bytes_accessed=int(2 * M * D * 4 + (D * Dff + Dff * D) * 2),
    )
    return pl.pallas_call(
        _ffn_kernel,
        out_shape=jax.ShapeDtypeStruct((M, D), jnp.float32),
        grid=(pl.cdiv(M, TM),),
        in_specs=[
            pl.BlockSpec((TM, D), lambda i: (i, 0)),
            pl.BlockSpec((D, Dff), lambda i: (0, 0)),
            pl.BlockSpec((1, Dff), lambda i: (0, 0)),
            pl.BlockSpec((Dff, D), lambda i: (0, 0)),
            pl.BlockSpec((1, D), lambda i: (0, 0)),
            pl.BlockSpec((1, D), lambda i: (0, 0)),
            pl.BlockSpec((1, D), lambda i: (0, 0)),
        ],
        out_specs=pl.BlockSpec((TM, D), lambda i: (i, 0)),
        compiler_params=pltpu.CompilerParams(
            dimension_semantics=("parallel",),
            vmem_limit_bytes=_VMEM_LINEAR,
        ),
        cost_estimate=cost,
    )(x, w1, b1.reshape(1, Dff), w2, b2.reshape(1, D),
      gamma.reshape(1, D), beta.reshape(1, D))


# ----------------------------------------------------------------------------
# MSDeformAttn core, grid = (batch, query-tile), all heads per step:
#   - sampling locations computed in-kernel from the fused projection output
#     (offlog = [off_x | off_y | logits], each grouped (head, level, point)) and
#     the de-interleaved reference points ([x per level | y per level]),
#   - per-head softmax over levels*points (EUP approx reciprocal),
#   - bilinear grid_sample (align_corners=False, zeros padding) as a strip-tiled
#     one-hot sampling matrix contracted with per-level/per-head value ref slices,
#   - lane-dense (TQ, d_model) bf16 output block.
# ----------------------------------------------------------------------------
def _deform_attn_kernel(value_ref, offlog_ref, refpt_ref, o_ref, *,
                        spatial_shapes, level_starts, n_heads, n_levels,
                        n_points, head_dim, hw_strip):
    H, L, P, Dh = n_heads, n_levels, n_points, head_dim
    LP = L * P
    HLP = H * LP

    offlog = offlog_ref[0]          # (TQ, 3*HLP) f32
    refpt = refpt_ref[0]            # (TQ, 2*L)   f32
    TQ = offlog.shape[0]

    head_outs = []
    for h in range(H):
        # softmax over all (levels * points) jointly, for this head
        lg = offlog[:, 2 * HLP + h * LP: 2 * HLP + (h + 1) * LP]
        lg = lg - jnp.max(lg, axis=-1, keepdims=True)
        e = jnp.exp(lg)
        aw = e * pl.reciprocal(jnp.sum(e, axis=-1, keepdims=True), approx=True)  # (TQ, LP)

        acc = jnp.zeros((TQ, Dh), jnp.float32)
        for l in range(L):
            Hl, Wl = spatial_shapes[l]
            HW = Hl * Wl
            start = level_starts[l]

            off_x = offlog[:, h * LP + l * P: h * LP + l * P + P]             # (TQ, P)
            off_y = offlog[:, HLP + h * LP + l * P: HLP + h * LP + l * P + P]
            a_l = aw[:, l * P:(l + 1) * P]                                    # (TQ, P)
            ref_x = refpt[:, l:l + 1]                                         # (TQ, 1)
            ref_y = refpt[:, L + l:L + l + 1]

            # sampling location (normalized), then grid_sample pixel coords
            # (align_corners=False): pix = loc * size - 0.5
            gx = ref_x + off_x * (1.0 / Wl)
            gy = ref_y + off_y * (1.0 / Hl)
            ix = gx * Wl - 0.5
            iy = gy * Hl - 0.5
            x0 = jnp.floor(ix)
            y0 = jnp.floor(iy)
            wx1 = ix - x0
            wx0 = 1.0 - wx1
            wy1 = iy - y0
            wy0 = 1.0 - wy1
            x0i = x0.astype(jnp.int32)
            y0i = y0.astype(jnp.int32)

            # per-corner flat index + masked (bilinear * attention) coefficient,
            # hoisted out of the HW strip loop
            corner_idx = []
            corner_coeff = []
            for (yc, xc, wgt) in ((y0i, x0i, wy0 * wx0),
                                  (y0i, x0i + 1, wy0 * wx1),
                                  (y0i + 1, x0i, wy1 * wx0),
                                  (y0i + 1, x0i + 1, wy1 * wx1)):
                valid = (xc >= 0) & (xc < Wl) & (yc >= 0) & (yc < Hl)   # zeros padding
                idx = jnp.clip(yc, 0, Hl - 1) * Wl + jnp.clip(xc, 0, Wl - 1)
                corner_idx.append(idx)                                   # (TQ, P)
                corner_coeff.append(jnp.where(valid, wgt, 0.0) * a_l)    # (TQ, P)

            # strip-tile the HW axis: live intermediate capped at (TQ, hw_strip)
            for s0 in range(0, HW, hw_strip):
                sw = min(hw_strip, HW - s0)
                iota_hw = lax.broadcasted_iota(jnp.int32, (1, sw), 1) + s0
                s_mat = jnp.zeros((TQ, sw), jnp.float32)
                for idx, coeff in zip(corner_idx, corner_coeff):
                    for p in range(P):
                        s_mat = s_mat + jnp.where(idx[:, p:p + 1] == iota_hw,
                                                  coeff[:, p:p + 1], 0.0)
                # per-level / per-head / per-strip static ref slice (bf16)
                v_ls = value_ref[0, start + s0: start + s0 + sw,
                                 h * Dh:(h + 1) * Dh]                     # (sw, Dh)
                acc = acc + jnp.dot(s_mat.astype(jnp.bfloat16), v_ls,
                                    preferred_element_type=jnp.float32)
        head_outs.append(acc)

    # lane-dense (TQ, d_model) store
    o_ref[0] = jnp.concatenate(head_outs, axis=-1).astype(o_ref.dtype)


def deform_attn_core(value, offlog, refpt, spatial_shapes, level_start_index,
                     n_heads, n_levels, n_points):
    N, Len_in, d_model = value.shape
    Lq = offlog.shape[1]
    Dh = d_model // n_heads
    HLP = n_heads * n_levels * n_points
    TQ = Lq if Lq <= _TQ_MAX else _TQ_MAX

    kernel = functools.partial(
        _deform_attn_kernel,
        spatial_shapes=tuple((int(h), int(w)) for (h, w) in spatial_shapes),
        level_starts=tuple(int(s) for s in level_start_index),
        n_heads=n_heads, n_levels=n_levels, n_points=n_points,
        head_dim=Dh, hw_strip=_HW_STRIP)

    n_qtiles = pl.cdiv(Lq, TQ)
    cost = pl.CostEstimate(
        # one-hot build (compare/select/add) + sampling matmul + softmax glue
        flops=int(N * n_heads * Lq * Len_in * (2 * Dh + 12 * n_points)
                  + 8 * N * n_heads * Lq * n_levels * n_points),
        transcendentals=int(N * n_heads * Lq * n_levels * n_points),
        bytes_accessed=int(value.size * 2 * n_qtiles          # resident slab re-use per tile
                           + offlog.size * 4 + refpt.size * 4
                           + N * Lq * d_model * 2),
    )

    return pl.pallas_call(
        kernel,
        out_shape=jax.ShapeDtypeStruct((N, Lq, d_model), jnp.bfloat16),
        grid=(N, n_qtiles),
        in_specs=[
            # per-batch value slab (bf16): resident across query tiles
            pl.BlockSpec((1, Len_in, d_model), lambda n, q: (n, 0, 0)),
            # fused projection output [off_x | off_y | logits], streamed per q-tile
            pl.BlockSpec((1, TQ, 3 * HLP), lambda n, q: (n, q, 0)),
            # reference points [x per level | y per level]
            pl.BlockSpec((1, TQ, 2 * n_levels), lambda n, q: (n, q, 0)),
        ],
        out_specs=pl.BlockSpec((1, TQ, d_model), lambda n, q: (n, q, 0)),
        compiler_params=pltpu.CompilerParams(
            # q axis "arbitrary": keeps the value slab resident and megacore splits on N
            dimension_semantics=("parallel", "arbitrary"),
            vmem_limit_bytes=_VMEM_ATTN,
        ),
        cost_estimate=cost,
    )(value, offlog, refpt)


# ----------------------------------------------------------------------------
# deterministic parameter init (synthetic; shapes match the PyTorch module)
# Matmul weights stored as (in, out) == PyTorch nn.Linear weight.T, in bf16.
# ----------------------------------------------------------------------------
def init_params(key, d_model, d_ffn, n_levels, n_heads, n_points):
    keys = jax.random.split(key, 6)

    def lin(k, din, dout, scale=0.05):
        kw, kb = jax.random.split(k)
        w = (jax.random.normal(kw, (din, dout), jnp.float32) * scale).astype(jnp.bfloat16)
        b = jax.random.normal(kb, (dout,), jnp.float32) * scale
        return w, b

    hlp = n_heads * n_levels * n_points
    return {
        "sampling_offsets": lin(keys[0], d_model, hlp * 2),
        "attention_weights": lin(keys[1], d_model, hlp),
        "value_proj": lin(keys[2], d_model, d_model),
        "output_proj": lin(keys[3], d_model, d_model),
        "linear1": lin(keys[4], d_model, d_ffn),
        "linear2": lin(keys[5], d_ffn, d_model),
        "norm1": (jnp.ones((d_model,), jnp.float32), jnp.zeros((d_model,), jnp.float32)),
        "norm2": (jnp.ones((d_model,), jnp.float32), jnp.zeros((d_model,), jnp.float32)),
    }


# ----------------------------------------------------------------------------
# full encoder-layer forward (MSDeformAttn self-attn + residual/LN + FFN)
# ----------------------------------------------------------------------------
def encoder_layer_forward(params, src, pos, reference_points,
                          spatial_shapes, level_start_index,
                          padding_mask=None, *, n_heads, n_levels, n_points):
    N, Lq, d_model = src.shape
    LP = n_levels * n_points
    HLP = n_heads * LP

    query = src + pos                                # with_pos_embed
    q2d = query.reshape(N * Lq, d_model)
    src2d = src.reshape(N * Lq, d_model)

    # --- value projection (Pallas tiled matmul), bf16 on the wire ---
    value = linear(src2d, *params["value_proj"], out_dtype=jnp.bfloat16)
    value = value.reshape(N, Lq, d_model)
    if padding_mask is not None:
        value = jnp.where(padding_mask[..., None], 0.0, value)

    # --- fused sampling_offsets + attention_weights projection (one matmul) ---
    # Weight columns permuted once (trace time) so the kernel reads a de-interleaved
    # layout: [off_x (h,l,p) | off_y (h,l,p) | logits (h,l,p)].
    w_off, b_off = params["sampling_offsets"]
    w_att, b_att = params["attention_weights"]
    w_off_r = (w_off.reshape(d_model, n_heads, n_levels, n_points, 2)
               .transpose(0, 4, 1, 2, 3).reshape(d_model, 2 * HLP))
    b_off_r = (b_off.reshape(n_heads, n_levels, n_points, 2)
               .transpose(3, 0, 1, 2).reshape(2 * HLP))
    w_cat = jnp.concatenate([w_off_r, w_att], axis=1)          # (d_model, 3*HLP)
    b_cat = jnp.concatenate([b_off_r, b_att], axis=0)
    offlog = linear(q2d, w_cat, b_cat, out_dtype=jnp.float32)  # (N*Lq, 3*HLP)
    offlog = offlog.reshape(N, Lq, 3 * HLP)

    # --- reference points, de-interleaved to [x per level | y per level] (tiny) ---
    refpt = reference_points.transpose(0, 1, 3, 2).reshape(N, Lq, 2 * n_levels)

    # --- deformable attention core (sampling locations computed in-kernel) ---
    attn = deform_attn_core(value, offlog, refpt, spatial_shapes, level_start_index,
                            n_heads, n_levels, n_points)        # (N, Lq, d_model) bf16
    attn2d = attn.reshape(N * Lq, d_model)

    # --- fused output_proj + residual + norm1 (dropout1 = identity) ---
    src_ln = proj_add_layernorm(attn2d, src2d, *params["output_proj"], *params["norm1"])

    # --- fused FFN + residual + norm2 (dropout2/3 = identity) ---
    out = ffn_forward(src_ln, *params["linear1"], *params["linear2"], *params["norm2"])
    return out.reshape(N, Lq, d_model)


if __name__ == "__main__":
    # small config consistent with the module (d_model, d_ffn, n_levels, n_heads, n_points)
    d_model, d_ffn = 32, 64
    n_levels, n_heads, n_points = 2, 4, 2
    spatial_shapes = ((4, 4), (2, 2))                 # per-level (H, W)
    level_start_index = (0, 16)
    Len = sum(h * w for h, w in spatial_shapes)        # 20
    N = 2

    key = jax.random.PRNGKey(0)
    kp, ks, kpos, kref = jax.random.split(key, 4)
    params = init_params(kp, d_model, d_ffn, n_levels, n_heads, n_points)

    src = jax.random.normal(ks, (N, Len, d_model), jnp.float32)
    pos = jax.random.normal(kpos, (N, Len, d_model), jnp.float32)
    reference_points = jax.random.uniform(kref, (N, Len, n_levels, 2), jnp.float32)

    out = encoder_layer_forward(params, src, pos, reference_points,
                                spatial_shapes, level_start_index,
                                padding_mask=None,
                                n_heads=n_heads, n_levels=n_levels,
                                n_points=n_points)
    jax.block_until_ready(out)
    assert out.shape == (N, Len, d_model)
    assert bool(jnp.all(jnp.isfinite(out)))
    print("KERNEL_OK")
</pallas_src>

<mosaic_0001>
module attributes {stable_mosaic.version = 11 : i64} {
  func.func @_linear_kernel(%arg0: i32, %arg1: memref<40x32xf32, #tpu.memory_space<vmem>>, %arg2: memref<32x32xbf16, #tpu.memory_space<vmem>>, %arg3: memref<1x32xf32, #tpu.memory_space<vmem>>, %arg4: memref<40x32xbf16, #tpu.memory_space<vmem>>) attributes {dimension_semantics = [#tpu.dimension_semantics<parallel>], iteration_bounds = array<i64: 1>, scalar_prefetch = 0 : i64, scratch_operands = 0 : i64, tpu.core_type = #tpu.core_type<tc>, window_params = [{transform_indices = @transform_0, window_bounds = array<i64: 40, 32>}, {pipeline_mode = #tpu.pipeline_mode<synchronous>, transform_indices = @transform_1, window_bounds = array<i64: 32, 32>}, {pipeline_mode = #tpu.pipeline_mode<synchronous>, transform_indices = @transform_2, window_bounds = array<i64: 1, 32>}, {transform_indices = @transform_3, window_bounds = array<i64: 40, 32>}]} {
    %c0 = arith.constant 0 : index
    %c0_0 = arith.constant 0 : index
    %0 = vector.load %arg1[%c0, %c0_0] : memref<40x32xf32, #tpu.memory_space<vmem>>, vector<40x32xf32>
    %1 = arith.truncf %0 : vector<40x32xf32> to vector<40x32xbf16>
    %c0_1 = arith.constant 0 : index
    %c0_2 = arith.constant 0 : index
    %2 = vector.load %arg2[%c0_1, %c0_2] : memref<32x32xbf16, #tpu.memory_space<vmem>>, vector<32x32xbf16>
    %cst = arith.constant dense<0.000000e+00> : vector<40x32xf32>
    %3 = tpu.matmul %1, %2, %cst {dimension_numbers = #tpu.dot_dimension_numbers<[1], [0], [0], [1], [0, 0, 1, 1], [], []>} : vector<40x32xbf16>, vector<32x32xbf16>, vector<40x32xf32> -> vector<40x32xf32>
    %c0_3 = arith.constant 0 : index
    %c0_4 = arith.constant 0 : index
    %4 = vector.load %arg3[%c0_3, %c0_4] : memref<1x32xf32, #tpu.memory_space<vmem>>, vector<1x32xf32>
    %5 = vector.broadcast %4 : vector<1x32xf32> to vector<40x32xf32>
    %6 = arith.addf %3, %5 : vector<40x32xf32>
    %7 = arith.truncf %6 : vector<40x32xf32> to vector<40x32xbf16>
    %c0_5 = arith.constant 0 : index
    %c0_6 = arith.constant 0 : index
    %8 = vector.load %arg4[%c0_5, %c0_6] : memref<40x32xbf16, #tpu.memory_space<vmem>>, vector<40x32xbf16>
    tpu.vector_store %arg4[%c0_5, %c0_6], %7 {strides = array<i32>} : memref<40x32xbf16, #tpu.memory_space<vmem>>, vector<40x32xbf16>,
    return
  }
  func.func @transform_0(%arg0: i32) -> (i32, i32) {
    %c0_i32 = arith.constant 0 : i32
    %c0_i32_0 = arith.constant 0 : i32
    return %arg0, %c0_i32 : i32, i32
  }
  func.func @transform_1(%arg0: i32) -> (i32, i32) {
    %c0_i32 = arith.constant 0 : i32
    %c0_i32_0 = arith.constant 0 : i32
    %c0_i32_1 = arith.constant 0 : i32
    return %c0_i32, %c0_i32_0 : i32, i32
  }
  func.func @transform_2(%arg0: i32) -> (i32, i32) {
    %c0_i32 = arith.constant 0 : i32
    %c0_i32_0 = arith.constant 0 : i32
    %c0_i32_1 = arith.constant 0 : i32
    return %c0_i32, %c0_i32_0 : i32, i32
  }
  func.func @transform_3(%arg0: i32) -> (i32, i32) {
    %c0_i32 = arith.constant 0 : i32
    %c0_i32_0 = arith.constant 0 : i32
    return %arg0, %c0_i32 : i32, i32
  }
}

</mosaic_0001>

<bundles_post_ra>
// kernel: tpu_custom_call.1
= control target key start
LH: loop header
LB: loop body
LE: loop exit
PB: predicated region body
PF: predicated region fallthrough
CT: control target
= control target key end

     0   :  { %v188_v0 = vmov 0.0   ;;  %vm189_vm0 = vmmov 0   ;;  %vm46_vm1 = vcmask 261120   ;;  %vm133_vm2 = vcmask 257024   ;;  %s257_s1 = inlined_call_operand.vmem [shape: bf16[32,32], index: 1, kind: input, shape index: {}]   ;;  %s258_s0 = inlined_call_operand.vmem [shape: f32[40,32], index: 0, kind: input, shape index: {}]   ;;  %s259_s2 = inlined_call_operand.vmem [shape: f32[1,32], index: 2, kind: input, shape index: {}]   ;;  %s260_s3 = inlined_call_operand.vmem [shape: bf16[40,32], index: 3, kind: output, shape index: {}]  }
   0x1   :  { %164 = vmatprep.subr.bf16.mxu0 %v188_v0  ;;  %180 = vmatprep.subr.bf16.mxu1 %v188_v0  ;;  %v186_v1 = vld [vmem:[%s257_s1 + $0x8] sm:$0xff]   ;;  %v187_v2 = vld [vmem:[%s257_s1] sm:$0xff]   ;;  %v17_v5 = vld [vmem:[%s258_s0 + $0x10] sm:$0xff] }
   0x2   :  { %168 = vmatprep.mubr.msk.bf16.mxu0 %vm189_vm0, %v188_v0  ;;  %172 = vmatprep.mubr.msk.bf16.mxu1 %vm189_vm0, %v188_v0  ;;  %v15_v3 = vld [vmem:[%s258_s0] sm:$0xff]  ;;  %v16_v4 = vld [vmem:[%s258_s0 + $0x8] sm:$0xff]  ;;  %v18_v6 = vld [vmem:[%s258_s0 + $0x18] sm:$0xff] }
   0x3   :  { %165 = vmatpush3.bf16.msra.mxu0 %v186_v1  ;;  %182 = vmatpush3.bf16.msra.mxu1 %v186_v1  ;;  %v20_v7 = vpack.c.bf16 %v16_v4, %v15_v3  ;;  %v21_v8 = vpack.c.bf16 %v18_v6, %v17_v5  ;;  %v19_v9 = vld [vmem:[%s258_s0 + $0x20] sm:$0xff] }
   0x4   :  { %166 = vmatprep.subr.bf16.mxu0 %v188_v0  ;;  %181 = vmatprep.subr.bf16.mxu1 %v188_v0  ;;  %v22_v10 = vpack.c.bf16 %v19_v9, %v19_v9  ;;  %v143_v11 = vld [vmem:[%s259_s2] ss:$0 sm:$0xff] }
   0x7   :  { %167 = vmatpush3.bf16.msra.mxu0 %v187_v2  ;;  %183 = vmatpush3.bf16.msra.mxu1 %v187_v2 }
   0xa   :  { %169 = vmatmul.mubr.msk.bf16.vlgmr.msra.gmra.mxu0 %vm46_vm1, %v20_v7  ;;  %173 = vmatmul.mubr.msk.bf16.vlgmr.msra.gmra.mxu1 %vm46_vm1, %v21_v8 }
   0xb   :  { %176 = vmatprep.mubr.msk.bf16.mxu1 %vm189_vm0, %v188_v0 }
  0x12   :  { %177 = vmatmul.mubr.msk.bf16.gmra.mxu1 %vm46_vm1, %v22_v10 }
  0xca   :  { %v90_v12 = vpop.f32.mrf.mxu0  ;;  %v98_v13 = vpop.f32.mrf.mxu1 }
  0xcb   :  { %v91_v14 = vadd.f32 %v143_v11, %v90_v12  ;;  %v99_v15 = vadd.f32 %v143_v11, %v98_v13 }
  0xcc   :  { %v170_v16 = vpop.f32.mrf.mxu0  ;;  %v174_v17 = vpop.f32.mrf.mxu1 }
  0xcd   :  { %v154_v18 = vpack.c.bf16 %v91_v14, %v91_v14  ;;  %v156_v19 = vpack.c.bf16 %v99_v15, %v99_v15 }
  0xce   :  { %v93_v20 = vpop.f32.mrf.mxu0  ;;  %v101_v21 = vpop.f32.mrf.mxu1 }
  0xcf   :  { %134 = vst.msk [vmem:[%s260_s3] sm:$0xf] %vm133_vm2, %v154_v18  ;;  %136 = vst.msk [vmem:[%s260_s3 + $0x8] sm:$0xf] %vm133_vm2, %v156_v19  ;;  %v94_v22 = vadd.f32 %v143_v11, %v93_v20  ;;  %v102_v23 = vadd.f32 %v143_v11, %v101_v21 }
  0xd0   :  { %v171_v24 = vpop.f32.mrf.mxu0  ;;  %v175_v25 = vpop.f32.mrf.mxu1 }
  0xd1   :  { %v155_v26 = vpack.c.bf16 %v94_v22, %v94_v22  ;;  %v157_v27 = vpack.c.bf16 %v102_v23, %v102_v23 }
  0xd2   :  { %v106_v28 = vpop.f32.mrf.mxu1 }
  0xd3   :  { %135 = vst.msk [vmem:[%s260_s3 + $0x4] sm:$0xf] %vm133_vm2, %v155_v26  ;;  %137 = vst.msk [vmem:[%s260_s3 + $0xc] sm:$0xf] %vm133_vm2, %v157_v27  ;;  %v107_v29 = vadd.f32 %v143_v11, %v106_v28 }
  0xd4   :  { %v178_v30 = vpop.f32.mrf.mxu1 }
  0xd5   :  { %v158_v31 = vpack.c.bf16 %v107_v29, %v107_v29 }
  0xd6   :  { %v109_v32 = vpop.f32.mrf.mxu1 }
  0xd7   :  { %138 = vst.msk [vmem:[%s260_s3 + $0x10] sm:$0xf] %vm133_vm2, %v158_v31 }
  0xd8   :  { %v179_v33 = vpop.f32.mrf.mxu1 }

</bundles_post_ra>
